<compile_context>
chip_gen: v6e
topology: v6e:2x2x1
jax: 0.10.0
libtpu: 0.0.40
codegen_flags: <defaults>
</compile_context>

<pallas_src>
import functools

import jax
import jax.numpy as jnp
from jax import lax
from jax.experimental import pallas as pl
from jax.experimental.pallas import tpu as pltpu


ROWS_PER_BLOCK = 8  # batch rows processed per grid step


def _embedding_kernel(cat_ids_ref, clk_ids_ref,      # [RB*S, 1] int32
                      cat_tab_ref, clk_tab_ref,      # [Vc, D], [Vk, D]
                      pos_ref,                       # [RB*S, D] (pos enc tiled RB times)
                      tim_ref,                       # [RB*S, D] gathered timeint rows
                      *rest,
                      keep_threshold, inv_keep_prob):
    if keep_threshold is None:
        (out_ref,) = rest
        bits_ref = None
    else:
        bits_ref, out_ref = rest

    m = cat_ids_ref.shape[0]            # RB * S rows in this block
    vc, _ = cat_tab_ref.shape
    vk = clk_tab_ref.shape[0]

    # f32 tables: force exact MXU passes so results match the gather reference.
    # bf16 tables: native single-pass MXU on v6e/v7x (one-hot 0/1 is exact in bf16).
    prec = (lax.Precision.HIGHEST if cat_tab_ref.dtype == jnp.float32
            else lax.Precision.DEFAULT)

    # Small-vocab lookups as one-hot matmuls on the (otherwise idle) MXU.
    onehot_c = (cat_ids_ref[...] ==
                lax.broadcasted_iota(jnp.int32, (m, vc), 1)).astype(cat_tab_ref.dtype)
    cat_e = jnp.dot(onehot_c, cat_tab_ref[...],
                    precision=prec, preferred_element_type=jnp.float32)

    onehot_k = (clk_ids_ref[...] ==
                lax.broadcasted_iota(jnp.int32, (m, vk), 1)).astype(clk_tab_ref.dtype)
    clk_e = jnp.dot(onehot_k, clk_tab_ref[...],
                    precision=prec, preferred_element_type=jnp.float32)

    summed = cat_e + pos_ref[...] + clk_e + tim_ref[...].astype(jnp.float32)

    if keep_threshold is not None:
        # Integer-domain keep mask (bits are uniform in [0, 2^24)); single fused
        # 1/(1-p) scale.  TODO(synk): cannot reproduce torch's dropout RNG stream
        # bit-exactly; keep/scale semantics match nn.Dropout in training mode.
        keep = bits_ref[...] >= jnp.int32(keep_threshold)
        summed = jnp.where(keep, summed, 0.0) * jnp.float32(inv_keep_prob)

    out_ref[...] = summed.astype(out_ref.dtype)


def make_positional_encoding(d_model, max_len):
    """Standard sinusoidal encoding (same as the module's PostionalEncoding)."""
    pos = jnp.arange(max_len, dtype=jnp.float32)[:, None]
    two_i = jnp.arange(0, d_model, 2, dtype=jnp.float32)
    angle = pos / jnp.power(10000.0, two_i / float(d_model))
    enc = jnp.zeros((max_len, d_model), jnp.float32)
    enc = enc.at[:, 0::2].set(jnp.sin(angle))
    enc = enc.at[:, 1::2].set(jnp.cos(angle))
    return enc


def transformer_embedding(x, cat_table, clk_table, tim_table, pos_encoding,
                          *, drop_prob=0.1, seed=0):
    """x: [B, 3, S] int (rows: cat, clk, timeint). Returns [B, S, d_model] f32."""
    B, three, S = x.shape
    assert three == 3
    Vc, D = cat_table.shape
    Vk, _ = clk_table.shape

    rb = ROWS_PER_BLOCK
    b_pad = ((B + rb - 1) // rb) * rb
    n_blk = b_pad // rb
    m_blk = rb * S                        # rows per grid step (multiple of 8)

    x_cat = x[:, 0, :].astype(jnp.int32)
    x_clk = x[:, 1, :].astype(jnp.int32)
    x_tim = x[:, 2, :].astype(jnp.int32)
    if b_pad != B:                        # pad batch to a multiple of the row block
        zpad = jnp.zeros((b_pad - B, S), jnp.int32)
        x_cat = jnp.concatenate([x_cat, zpad], axis=0)
        x_clk = jnp.concatenate([x_clk, zpad], axis=0)
        x_tim = jnp.concatenate([x_tim, zpad], axis=0)

    cat_ids = x_cat.reshape(b_pad * S, 1)        # flat, lane-dim 1: no in-kernel relayout
    clk_ids = x_clk.reshape(b_pad * S, 1)

    # Large-vocab (282K-row) timeint lookup: XLA gather in the wrapper.  Per-row
    # in-kernel DMAs would move only D*4 bytes each (descriptor-bound on every
    # generation); the gathered slab streams through a pipelined BlockSpec instead.
    tim_emb = tim_table[x_tim.reshape(-1)]                       # [b_pad*S, D]

    # Positional encoding tiled once per row block; constant index_map keeps it
    # resident in VMEM across grid steps.
    pos_blk = jnp.tile(pos_encoding[:S, :].astype(jnp.float32), (rb, 1))   # [rb*S, D]

    drop_prob = float(drop_prob)
    if drop_prob > 0.0:
        keep_threshold = int(round(drop_prob * (1 << 24)))
        inv_keep = 1.0 / (1.0 - drop_prob)
        bits = jax.random.randint(jax.random.PRNGKey(seed), (b_pad * S, D),
                                  0, 1 << 24, dtype=jnp.int32)
        extra_inputs = (bits,)
        extra_specs = [pl.BlockSpec((m_blk, D), lambda i: (i, 0))]
    else:
        keep_threshold = None
        inv_keep = 1.0
        extra_inputs = ()
        extra_specs = []

    kernel = functools.partial(_embedding_kernel,
                               keep_threshold=keep_threshold,
                               inv_keep_prob=inv_keep)

    grid_spec = pltpu.PrefetchScalarGridSpec(
        num_scalar_prefetch=0,
        grid=(n_blk,),
        in_specs=[
            pl.BlockSpec((m_blk, 1), lambda i: (i, 0)),     # cat ids
            pl.BlockSpec((m_blk, 1), lambda i: (i, 0)),     # clk ids
            pl.BlockSpec((Vc, D), lambda i: (0, 0)),        # cat table (VMEM resident)
            pl.BlockSpec((Vk, D), lambda i: (0, 0)),        # clk table (VMEM resident)
            pl.BlockSpec((m_blk, D), lambda i: (0, 0)),     # tiled pos enc (resident)
            pl.BlockSpec((m_blk, D), lambda i: (i, 0)),     # gathered timeint rows
        ] + extra_specs,
        out_specs=pl.BlockSpec((m_blk, D), lambda i: (i, 0)),
    )

    # Explicit VMEM budget with headroom; stays well inside v7x's 64 MiB.
    blk_elems = (2 * m_blk + Vc * D + Vk * D
                 + (3 + len(extra_inputs)) * m_blk * D)
    vmem_limit = int(min(32 * 1024 * 1024, max(16 * 1024 * 1024, 4 * 4 * blk_elems)))

    out_flat = pl.pallas_call(
        kernel,
        out_shape=jax.ShapeDtypeStruct((b_pad * S, D), jnp.float32),
        grid_spec=grid_spec,
        compiler_params=pltpu.CompilerParams(
            dimension_semantics=("parallel",),   # independent batch blocks (v7x megacore)
            vmem_limit_bytes=vmem_limit),
    )(cat_ids, clk_ids, cat_table, clk_table, pos_blk, tim_emb, *extra_inputs)

    return out_flat.reshape(b_pad, S, D)[:B]


if __name__ == "__main__":
    key = jax.random.PRNGKey(0)
    B, S, D = 2, 8, 32
    max_len = 16
    pad_unk = [(0, 1, 47), (0, 1, 7)]     # -> cat vocab = 48, clk vocab = 8
    Vc = pad_unk[0][2] + 1
    Vk = pad_unk[1][2] + 1
    Vt = 282121                           # hardcoded in the PyTorch module
    drop_prob = 0.1

    k1, k2, k3, k4, k5, k6 = jax.random.split(key, 6)
    cat_table = jax.random.normal(k1, (Vc, D), jnp.float32)
    clk_table = jax.random.normal(k2, (Vk, D), jnp.float32)
    tim_table = jax.random.normal(k3, (Vt, D), jnp.float32)
    pos_enc = make_positional_encoding(D, max_len)

    x_cat = jax.random.randint(k4, (B, S), 0, Vc)
    x_clk = jax.random.randint(k5, (B, S), 0, Vk)
    x_tim = jax.random.randint(k6, (B, S), 0, Vt)
    x = jnp.stack([x_cat, x_clk, x_tim], axis=1).astype(jnp.int32)   # [B, 3, S]

    # Deterministic check vs. pure-JAX reference (dropout disabled).
    out_nodrop = jax.block_until_ready(
        transformer_embedding(x, cat_table, clk_table, tim_table, pos_enc,
                              drop_prob=0.0))
    ref = (cat_table[x_cat] + pos_enc[:S][None, :, :]
           + clk_table[x_clk] + tim_table[x_tim])
    assert out_nodrop.shape == (B, S, D)
    assert jnp.allclose(out_nodrop, ref, atol=1e-4, rtol=1e-4), "mismatch vs reference"

    # Training-mode dropout (keep/scale semantics of nn.Dropout; RNG differs from torch).
    out = jax.block_until_ready(
        transformer_embedding(x, cat_table, clk_table, tim_table, pos_enc,
                              drop_prob=drop_prob, seed=1234))
    assert out.shape == (B, S, D)
    assert bool(jnp.all(jnp.isfinite(out)))
    zero_frac = float(jnp.mean((out == 0.0).astype(jnp.float32)))
    assert 0.01 <= zero_frac <= 0.35, f"implausible dropout zero fraction {zero_frac}"
    print("KERNEL_OK")
</pallas_src>

<mosaic_0001>
module attributes {stable_mosaic.version = 11 : i64} {
  func.func @_embedding_kernel(%arg0: i32, %arg1: memref<64x1xi32, #tpu.memory_space<vmem>>, %arg2: memref<64x1xi32, #tpu.memory_space<vmem>>, %arg3: memref<48x32xf32, #tpu.memory_space<vmem>>, %arg4: memref<8x32xf32, #tpu.memory_space<vmem>>, %arg5: memref<64x32xf32, #tpu.memory_space<vmem>>, %arg6: memref<64x32xf32, #tpu.memory_space<vmem>>, %arg7: memref<64x32xf32, #tpu.memory_space<vmem>>) attributes {dimension_semantics = [#tpu.dimension_semantics<parallel>], iteration_bounds = array<i64: 1>, scalar_prefetch = 0 : i64, scratch_operands = 0 : i64, tpu.core_type = #tpu.core_type<tc>, window_params = [{transform_indices = @transform_0, window_bounds = array<i64: 64, 1>}, {transform_indices = @transform_1, window_bounds = array<i64: 64, 1>}, {pipeline_mode = #tpu.pipeline_mode<synchronous>, transform_indices = @transform_2, window_bounds = array<i64: 48, 32>}, {pipeline_mode = #tpu.pipeline_mode<synchronous>, transform_indices = @transform_3, window_bounds = array<i64: 8, 32>}, {pipeline_mode = #tpu.pipeline_mode<synchronous>, transform_indices = @transform_4, window_bounds = array<i64: 64, 32>}, {transform_indices = @transform_5, window_bounds = array<i64: 64, 32>}, {transform_indices = @transform_6, window_bounds = array<i64: 64, 32>}]} {
    %c0 = arith.constant 0 : index
    %c0_0 = arith.constant 0 : index
    %0 = vector.load %arg1[%c0, %c0_0] : memref<64x1xi32, #tpu.memory_space<vmem>>, vector<64x1xi32>
    %1 = tpu.iota {dimensions = array<i32: 1>} : vector<64x48xi32>
    %2 = vector.broadcast %0 : vector<64x1xi32> to vector<64x48xi32>
    %3 = arith.cmpi eq, %2, %1 : vector<64x48xi32>
    %4 = arith.extui %3 : vector<64x48xi1> to vector<64x48xi32>
    %5 = arith.sitofp %4 : vector<64x48xi32> to vector<64x48xf32>
    %c0_1 = arith.constant 0 : index
    %c0_2 = arith.constant 0 : index
    %6 = vector.load %arg3[%c0_1, %c0_2] : memref<48x32xf32, #tpu.memory_space<vmem>>, vector<48x32xf32>
    %cst = arith.constant dense<0.000000e+00> : vector<64x32xf32>
    %7 = tpu.matmul %5, %6, %cst {dimension_numbers = #tpu.dot_dimension_numbers<[1], [0], [0], [1], [0, 0, 1, 1], [], []>, precision = #tpu.contract_precision<fp32>} : vector<64x48xf32>, vector<48x32xf32>, vector<64x32xf32> -> vector<64x32xf32>
    %c0_3 = arith.constant 0 : index
    %c0_4 = arith.constant 0 : index
    %8 = vector.load %arg2[%c0_3, %c0_4] : memref<64x1xi32, #tpu.memory_space<vmem>>, vector<64x1xi32>
    %9 = tpu.iota {dimensions = array<i32: 1>} : vector<64x8xi32>
    %10 = vector.broadcast %8 : vector<64x1xi32> to vector<64x8xi32>
    %11 = arith.cmpi eq, %10, %9 : vector<64x8xi32>
    %12 = arith.extui %11 : vector<64x8xi1> to vector<64x8xi32>
    %13 = arith.sitofp %12 : vector<64x8xi32> to vector<64x8xf32>
    %c0_5 = arith.constant 0 : index
    %c0_6 = arith.constant 0 : index
    %14 = vector.load %arg4[%c0_5, %c0_6] : memref<8x32xf32, #tpu.memory_space<vmem>>, vector<8x32xf32>
    %cst_7 = arith.constant dense<0.000000e+00> : vector<64x32xf32>
    %15 = tpu.matmul %13, %14, %cst_7 {dimension_numbers = #tpu.dot_dimension_numbers<[1], [0], [0], [1], [0, 0, 1, 1], [], []>, precision = #tpu.contract_precision<fp32>} : vector<64x8xf32>, vector<8x32xf32>, vector<64x32xf32> -> vector<64x32xf32>
    %c0_8 = arith.constant 0 : index
    %c0_9 = arith.constant 0 : index
    %16 = vector.load %arg5[%c0_8, %c0_9] : memref<64x32xf32, #tpu.memory_space<vmem>>, vector<64x32xf32>
    %17 = arith.addf %7, %16 : vector<64x32xf32>
    %18 = arith.addf %17, %15 : vector<64x32xf32>
    %c0_10 = arith.constant 0 : index
    %c0_11 = arith.constant 0 : index
    %19 = vector.load %arg6[%c0_10, %c0_11] : memref<64x32xf32, #tpu.memory_space<vmem>>, vector<64x32xf32>
    %20 = arith.addf %18, %19 : vector<64x32xf32>
    %c0_12 = arith.constant 0 : index
    %c0_13 = arith.constant 0 : index
    %21 = vector.load %arg7[%c0_12, %c0_13] : memref<64x32xf32, #tpu.memory_space<vmem>>, vector<64x32xf32>
    tpu.vector_store %arg7[%c0_12, %c0_13], %20 {strides = array<i32>} : memref<64x32xf32, #tpu.memory_space<vmem>>, vector<64x32xf32>,
    return
  }
  func.func @transform_0(%arg0: i32) -> (i32, i32) {
    %c0_i32 = arith.constant 0 : i32
    %c0_i32_0 = arith.constant 0 : i32
    return %arg0, %c0_i32 : i32, i32
  }
  func.func @transform_1(%arg0: i32) -> (i32, i32) {
    %c0_i32 = arith.constant 0 : i32
    %c0_i32_0 = arith.constant 0 : i32
    return %arg0, %c0_i32 : i32, i32
  }
  func.func @transform_2(%arg0: i32) -> (i32, i32) {
    %c0_i32 = arith.constant 0 : i32
    %c0_i32_0 = arith.constant 0 : i32
    %c0_i32_1 = arith.constant 0 : i32
    return %c0_i32, %c0_i32_0 : i32, i32
  }
  func.func @transform_3(%arg0: i32) -> (i32, i32) {
    %c0_i32 = arith.constant 0 : i32
    %c0_i32_0 = arith.constant 0 : i32
    %c0_i32_1 = arith.constant 0 : i32
    return %c0_i32, %c0_i32_0 : i32, i32
  }
  func.func @transform_4(%arg0: i32) -> (i32, i32) {
    %c0_i32 = arith.constant 0 : i32
    %c0_i32_0 = arith.constant 0 : i32
    %c0_i32_1 = arith.constant 0 : i32
    return %c0_i32, %c0_i32_0 : i32, i32
  }
  func.func @transform_5(%arg0: i32) -> (i32, i32) {
    %c0_i32 = arith.constant 0 : i32
    %c0_i32_0 = arith.constant 0 : i32
    return %arg0, %c0_i32 : i32, i32
  }
  func.func @transform_6(%arg0: i32) -> (i32, i32) {
    %c0_i32 = arith.constant 0 : i32
    %c0_i32_0 = arith.constant 0 : i32
    return %arg0, %c0_i32 : i32, i32
  }
}

</mosaic_0001>

<bundles_post_ra>
// kernel: tpu_custom_call.1
= control target key start
LH: loop header
LB: loop body
LE: loop exit
PB: predicated region body
PF: predicated region fallthrough
CT: control target
= control target key end

     0   :  { %v2232_v0 = vmov 0   ;;  %v31_v23 = vlaneseq  ;;  %vm144_vm0 = vcmask 64512   ;;  %v2233_v27 = vmov 0.0   ;;  %s3015_s1 = inlined_call_operand.vmem [shape: s32[64,1], index: 1, kind: input, shape index: {}]   ;;  %s3016_s3 = inlined_call_operand.vmem [shape: f32[8,32], index: 3, kind: input, shape index: {}]   ;;  %s3017_s0 = inlined_call_operand.vmem [shape: s32[64,1], index: 0, kind: input, shape index: {}]   ;;  %s3018_s2 = inlined_call_operand.vmem [shape: f32[48,32], index: 2, kind: input, shape index: {}]   ;;  %s3019_s4 = inlined_call_operand.vmem [shape: f32[64,32], index: 4, kind: input, shape index: {}]   ;;  %s3020_s5 = inlined_call_operand.vmem [shape: f32[64,32], index: 5, kind: input, shape index: {}]   ;;  %s3021_s6 = inlined_call_operand.vmem [shape: f32[64,32], index: 6, kind: output, shape index: {}]  }
   0x1   :  { %2231 = vset.pattern.permute.xlu1 %v2232_v0  ;;  %2230 = vset.pattern.permute.xlu0 %v2232_v0  ;;  %v89_v1 = vld [vmem:[%s3015_s1 + $0x10] sm:$0xff]  ;;  %v87_v2 = vld [vmem:[%s3015_s1] sm:$0xff]  ;;  %v90_v3 = vld [vmem:[%s3015_s1 + $0x18] sm:$0xff]  ;;  %vm924_vm13 = vcmask 392192  }
   0x2   :  { %102 = vperm.xlu1 %2231, %v89_v1   ;;  %96 = vperm.xlu0 %2230, %v87_v2   ;;  %v88_v4 = vld [vmem:[%s3015_s1 + $0x8] sm:$0xff]  ;;  %v143_v5 = vld [vmem:[%s3016_s3] sm:$0xff]  ;;  %v94_v10 = vld [vmem:[%s3015_s1 + $0x38] sm:$0xff]  ;;  %v2334_v24 = vand.u32 127, %v31_v23 }
   0x3   :  { %v92_v6 = vld [vmem:[%s3015_s1 + $0x28] sm:$0xff]  ;;  %v91_v7 = vld [vmem:[%s3015_s1 + $0x20] sm:$0xff]  ;;  %v2290_v8 = vand.u32 4294901760, %v143_v5  ;;  %v93_v11 = vld [vmem:[%s3015_s1 + $0x30] sm:$0xff] }
   0x4   :  { %v24_v14 = vld [vmem:[%s3017_s0 + $0x8] sm:$0xff]  ;;  %v23_v15 = vld [vmem:[%s3017_s0] sm:$0xff]  ;;  %v26_v17 = vld [vmem:[%s3017_s0 + $0x18] sm:$0xff] }
   0x5   :  { %v2293_v9 = vsub.f32 %v143_v5, %v2290_v8  ;;  %2000 = vmatprep.subr.mxu0 %v2290_v8  ;;  %v25_v18 = vld [vmem:[%s3017_s0 + $0x10] sm:$0xff]  ;;  %v28_v19 = vld [vmem:[%s3017_s0 + $0x28] sm:$0xff]  ;;  %v27_v20 = vld [vmem:[%s3017_s0 + $0x20] sm:$0xff] }
   0x6   :  { %105 = vperm.xlu1 %2231, %v90_v3   ;;  %99 = vperm.xlu0 %2230, %v88_v4   ;;  %v30_v21 = vld [vmem:[%s3017_s0 + $0x38] sm:$0xff]  ;;  %v29_v22 = vld [vmem:[%s3017_s0 + $0x30] sm:$0xff]  ;;  %v86_v30 = vld [vmem:[%s3018_s2 + $0x28] sm:$0xff] }
   0x7   :  { %v2303_v12 = vand.u32 4294901760, %v2293_v9  ;;  %2001 = vmatpush3.msra.mxu0 %v2290_v8  ;;  %v2359_v37 = vand.u32 4294901760, %v86_v30 }
   0x8   :  { %2028 = vmatprep.subr.mxu0 %v2293_v9 }
   0x9   :  { %v349_v13 = vsub.f32 %v2293_v9, %v2303_v12  ;;  %v2388_v49 = vsub.f32 %v86_v30, %v2359_v37 }
   0xa   :  { %111 = vperm.xlu1 %2231, %v92_v6   ;;  %108 = vperm.xlu0 %2230, %v91_v7  }
   0xb   :  { %v350_v16 = vand.u32 4294901760, %v349_v13  ;;  %v2421_v0 = vand.u32 4294901760, %v2388_v49 }
   0xd   :  { %2014 = vmatprep.subr.mxu1 %v350_v16 }
   0xe   :  { %117 = vperm.xlu1 %2231, %v94_v10   ;;  %114 = vperm.xlu0 %2230, %v93_v11  }
   0xf   :  { %2015 = vmatpush3.msra.mxu1 %v350_v16 }
  0x10   :  { %2042 = vmatprep.subr.mxu1 %v2290_v8 }
  0x12   :  { %37 = vperm.xlu1 %2231, %v24_v14   ;;  %34 = vperm.xlu0 %2230, %v23_v15  }
  0x16   :  { %43 = vperm.xlu1 %2231, %v26_v17   ;;  %40 = vperm.xlu0 %2230, %v25_v18   ;;  %v1124_v17 = vsub.f32 %v2388_v49, %v2421_v0 }
  0x1a   :  { %49 = vperm.xlu1 %2231, %v28_v19   ;;  %46 = vperm.xlu0 %2230, %v27_v20  }
  0x1e   :  { %55 = vperm.xlu1 %2231, %v30_v21   ;;  %52 = vperm.xlu0 %2230, %v29_v22   ;;  %v85_v22 = vld [vmem:[%s3018_s2 + $0x20] sm:$0xff] }
  0x1f   :  { %v2467_v30 = vand.u32 4294901760, %v85_v22 }
  0x7d   :  { %v103_v25 = vpop.permute.xlu1 %102  ;;  %v97_v26 = vpop.permute.xlu0 %96 }
  0x7e   :  { %vm121_vm1 = vcmp.eq.s32.totalorder %v103_v25, %v2334_v24  ;;  %vm119_vm2 = vcmp.eq.s32.totalorder %v97_v26, %v2334_v24 }
  0x7f   :  { %v2339_v28 = vsel %vm121_vm1, 1.0, %v2233_v27  ;;  %v2342_v29 = vsel %vm119_vm2, 1.0, %v2233_v27 }
  0x80   :  { %v152_v31 = vsel %vm144_vm0, %v2339_v28, 0  ;;  %2016 = vmatprep.mubr.msk.f32.mxu1 %vm144_vm0, %v2342_v29  ;;  %v146_v32 = vsel %vm144_vm0, %v2342_v29, 0 }
  0x81   :  { %v2353_v33 = vsub.f32 %v152_v31, %v152_v31  ;;  %v106_v34 = vpop.permute.xlu1 %105  ;;  %v100_v35 = vpop.permute.xlu0 %99  ;;  %v2355_v36 = vsub.f32 %v146_v32, %v146_v32 }
  0x82   :  { %vm122_vm3 = vcmp.eq.s32.totalorder %v106_v34, %v2334_v24  ;;  %vm120_vm4 = vcmp.eq.s32.totalorder %v100_v35, %v2334_v24  ;;  %v1125_v35 = vand.u32 4294901760, %v1124_v17 }
  0x83   :  { %v2362_v38 = vsel %vm122_vm3, 1.0, %v2233_v27  ;;  %v2365_v39 = vsel %vm120_vm4, 1.0, %v2233_v27  ;;  %v237_v40 = vand.u32 4294901760, %v2355_v36  ;;  %v257_v43 = vand.u32 4294901760, %v2353_v33 }
  0x84   :  { %v155_v41 = vsel %vm144_vm0, %v2362_v38, 0  ;;  %v149_v42 = vsel %vm144_vm0, %v2365_v39, 0  ;;  %2017 = vmatmul.mubr.msk.f32.vlgmr.msra.gmra.mxu1 %vm144_vm0, %v2365_v39 }
  0x85   :  { %v2375_v44 = vsub.f32 %v155_v41, %v155_v41  ;;  %v2377_v45 = vsub.f32 %v149_v42, %v149_v42  ;;  %v112_v46 = vpop.permute.xlu1 %111  ;;  %2019 = vmatprep.mubr.msk.f32.mxu1 %vm144_vm0, %v2339_v28  ;;  %v109_v47 = vpop.permute.xlu0 %108  ;;  %v238_v48 = vsub.f32 %v2355_v36, %v237_v40  ;;  %2043 = vmatpush3.msra.mxu1 %v2290_v8  ;;  %v84_v41 = vld [vmem:[%s3018_s2 + $0x18] sm:$0xff] }
  0x86   :  { %vm124_vm5 = vcmp.eq.s32.totalorder %v112_v46, %v2334_v24  ;;  %vm123_vm6 = vcmp.eq.s32.totalorder %v109_v47, %v2334_v24  ;;  %2070 = vmatprep.subr.mxu1 %v2290_v8  ;;  %v258_v56 = vsub.f32 %v2353_v33, %v257_v43  ;;  %v2480_v46 = vsub.f32 %v85_v22, %v2467_v30 }
  0x87   :  { %v2391_v50 = vsel %vm124_vm5, 1.0, %v2233_v27  ;;  %v2394_v51 = vsel %vm123_vm6, 1.0, %v2233_v27  ;;  %v239_v52 = vand.u32 4294901760, %v238_v48  ;;  %v247_v53 = vand.u32 4294901760, %v2377_v45 }
  0x88   :  { %v161_v54 = vsel %vm144_vm0, %v2391_v50, 0  ;;  %v158_v55 = vsel %vm144_vm0, %v2394_v51, 0  ;;  %2020 = vmatmul.mubr.msk.f32.gmra.mxu1 %vm144_vm0, %v2362_v38  ;;  %v267_v57 = vand.u32 4294901760, %v2375_v44  ;;  %v259_v7 = vand.u32 4294901760, %v258_v56 }
  0x89   :  { %v2408_v58 = vsub.f32 %v161_v54, %v161_v54  ;;  %v2410_v59 = vsub.f32 %v158_v55, %v158_v55  ;;  %v118_v60 = vpop.permute.xlu1 %117  ;;  %2002 = vmatprep.mubr.f32.mxu0 %v239_v52  ;;  %2022 = vmatprep.mubr.msk.f32.mxu1 %vm144_vm0, %v2394_v51  ;;  %v115_v61 = vpop.permute.xlu0 %114  ;;  %v248_v62 = vsub.f32 %v2377_v45, %v247_v53  ;;  %v2485_v52 = vand.u32 4294901760, %v84_v41 }
  0x8a   :  { %vm126_vm7 = vcmp.eq.s32.totalorder %v118_v60, %v2334_v24  ;;  %vm125_vm8 = vcmp.eq.s32.totalorder %v115_v61, %v2334_v24  ;;  %v268_v63 = vsub.f32 %v2375_v44, %v267_v57  ;;  %v2496_v54 = vand.u32 4294901760, %v2480_v46  ;;  %v82_v61 = vld [vmem:[%s3018_s2 + $0x8] sm:$0xff] }
  0x8b   :  { %v2424_v1 = vsel %vm126_vm7, 1.0, %v2233_v27  ;;  %v2427_v2 = vsel %vm125_vm8, 1.0, %v2233_v27  ;;  %v249_v3 = vand.u32 4294901760, %v248_v62  ;;  %v277_v4 = vand.u32 4294901760, %v2410_v59  ;;  %v81_v62 = vld [vmem:[%s3018_s2] sm:$0xff] }
  0x8c   :  { %v167_v5 = vsel %vm144_vm0, %v2424_v1, 0  ;;  %v164_v6 = vsel %vm144_vm0, %v2427_v2, 0  ;;  %2023 = vmatmul.mubr.msk.f32.gmra.mxu1 %vm144_vm0, %v2391_v50  ;;  %v287_v10 = vand.u32 4294901760, %v2408_v58  ;;  %v269_v18 = vand.u32 4294901760, %v268_v63 }
  0x8d   :  { %v2437_v11 = vsub.f32 %v167_v5, %v167_v5  ;;  %v2439_v13 = vsub.f32 %v164_v6, %v164_v6  ;;  %2003 = vmatmul.mubr.f32.vlgmr.msra.gmra.mxu0 %v249_v3  ;;  %2025 = vmatprep.mubr.msk.f32.mxu1 %vm144_vm0, %v2427_v2  ;;  %v2443_v14 = vpop.permute.xlu1 %37  ;;  %v2445_v15 = vpop.permute.xlu0 %34  ;;  %v278_v16 = vsub.f32 %v2410_v59, %v277_v4 }
  0x8e   :  { %2029 = vmatpush3.msra.mxu0 %v2293_v9  ;;  %2005 = vmatprep.mubr.f32.mxu0 %v259_v7  ;;  %v288_v20 = vsub.f32 %v2408_v58, %v287_v10  ;;  %v1131_v63 = vsub.f32 %v2480_v46, %v2496_v54  ;;  %vm57_vm12 = vcmp.eq.s32.totalorder %v2445_v15, %v2334_v24 }
  0x8f   :  { %v279_v19 = vand.u32 4294901760, %v278_v16  ;;  %v297_v21 = vand.u32 4294901760, %v2439_v13  ;;  %2056 = vmatprep.subr.mxu0 %v2303_v12  ;;  %v307_v9 = vand.u32 4294901760, %v2437_v11  ;;  %vm58_vm14 = vcmp.eq.s32.totalorder %v2443_v14, %v2334_v24 }
  0x90   :  { %2026 = vmatmul.mubr.msk.f32.gmra.mxu1 %vm144_vm0, %v2424_v1  ;;  %v289_v31 = vand.u32 4294901760, %v288_v20  ;;  %v2583_v14 = vsel %vm58_vm14, 1.0, %v2233_v27 }
  0x91   :  { %2006 = vmatmul.mubr.f32.gmra.mxu0 %v269_v18  ;;  %2044 = vmatprep.mubr.f32.mxu1 %v237_v40  ;;  %v2462_v23 = vpop.permute.xlu1 %43  ;;  %v2464_v25 = vpop.permute.xlu0 %40  ;;  %v298_v26 = vsub.f32 %v2439_v13, %v297_v21  ;;  %v308_v34 = vsub.f32 %v2437_v11, %v307_v9 }
  0x92   :  { %2008 = vmatprep.mubr.f32.mxu0 %v279_v19  ;;  %vm59_vm15 = vcmp.eq.s32.totalorder %v2464_v25, %v2334_v24  ;;  %vm60_vm1 = vcmp.eq.s32.totalorder %v2462_v23, %v2334_v24 }
  0x93   :  { %v299_v32 = vand.u32 4294901760, %v298_v26  ;;  %v309_v48 = vand.u32 4294901760, %v308_v34  ;;  %v2597_v19 = vsel %vm59_vm15, 1.0, %v2233_v27 }
  0x94   :  { %2045 = vmatmul.mubr.f32.vlgmr.msra.gmra.mxu1 %v247_v53 }
  0x95   :  { %2009 = vmatmul.mubr.f32.gmra.mxu0 %v289_v31  ;;  %2047 = vmatprep.mubr.f32.mxu1 %v257_v43  ;;  %v50_v40 = vpop.permute.xlu1 %49  ;;  %v2475_v42 = vpop.permute.xlu0 %46  ;;  %v83_v43 = vld [vmem:[%s3018_s2 + $0x10] sm:$0xff] }
  0x96   :  { %vm62_vm9 = vcmp.eq.s32.totalorder %v50_v40, %v2334_v24  ;;  %2011 = vmatprep.mubr.f32.mxu0 %v299_v32  ;;  %2071 = vmatpush3.msra.mxu1 %v2290_v8  ;;  %v2507_v60 = vand.u32 4294901760, %v83_v43  ;;  %vm61_vm2 = vcmp.eq.s32.totalorder %v2475_v42, %v2334_v24 }
  0x97   :  { %v2483_v47 = vsel %vm62_vm9, 1.0, %v2233_v27  ;;  %2108 = vmatprep.subr.mxu1 %v1125_v35 }
  0x98   :  { %2048 = vmatmul.mubr.f32.gmra.mxu1 %v267_v57  ;;  %v2505_v57 = vsub.f32 %v84_v41, %v2485_v52 }
  0x99   :  { %2012 = vmatmul.mubr.f32.gmra.mxu0 %v309_v48  ;;  %2050 = vmatprep.mubr.f32.mxu1 %v277_v4  ;;  %v56_v8 = vpop.permute.xlu1 %55  ;;  %v53_v53 = vpop.permute.xlu0 %52  ;;  %v1132_v4 = vand.u32 4294901760, %v1131_v63 }
  0x9a   :  { %vm64_vm10 = vcmp.eq.s32.totalorder %v56_v8, %v2334_v24  ;;  %vm63_vm11 = vcmp.eq.s32.totalorder %v53_v53, %v2334_v24  ;;  %2030 = vmatprep.mubr.f32.mxu0 %v2355_v36  ;;  %v2515_v36 = vand.u32 4294901760, %v82_v61  ;;  %v2524_v3 = vand.u32 4294901760, %v2505_v57 }
  0x9b   :  { %v2499_v55 = vsel %vm64_vm10, 1.0, %v2233_v27  ;;  %v2502_v56 = vsel %vm63_vm11, 1.0, %v2233_v27 }
  0x9c   :  { %2051 = vmatmul.mubr.f32.gmra.mxu1 %v287_v10  ;;  %v1138_v5 = vsub.f32 %v2505_v57, %v2524_v3  ;;  %v2562_v10 = vsel %vm57_vm12, 1.0, %v2233_v27  ;;  %v947_v42 = vsel %vm924_vm13, %v2499_v55, 0 }
  0x9d   :  { %2031 = vmatmul.mubr.f32.vlgmr.msra.gmra.mxu0 %v2377_v45  ;;  %2053 = vmatprep.mubr.f32.mxu1 %v297_v21  ;;  %v2527_v45 = vsub.f32 %v83_v43, %v2507_v60  ;;  %v2610_v21 = vsel %vm60_vm1, 1.0, %v2233_v27 }
  0x9e   :  { %2057 = vmatpush3.msra.mxu0 %v2303_v12  ;;  %2033 = vmatprep.mubr.f32.mxu0 %v2353_v33  ;;  %v2532_v12 = vand.u32 4294901760, %v81_v62  ;;  %v2536_v33 = vsub.f32 %v82_v61, %v2515_v36  ;;  %v1139_v7 = vand.u32 4294901760, %v1138_v5  ;;  %v935_v23 = vsel %vm924_vm13, %v2610_v21, 0 }
  0x9f   :  { %2084 = vmatprep.subr.mxu0 %v2359_v37  ;;  %v2541_v6 = vand.u32 4294901760, %v2527_v45  ;;  %v2643_v26 = vsub.f32 %v935_v23, %v935_v23  ;;  %v2690_v61 = vsub.f32 %v947_v42, %v947_v42 }
  0xa0   :  { %2054 = vmatmul.mubr.f32.gmra.mxu1 %v307_v9  ;;  %v2622_v9 = vsel %vm61_vm2, 1.0, %v2233_v27 }
  0xa1   :  { %2034 = vmatmul.mubr.f32.gmra.mxu0 %v2375_v44  ;;  %2072 = vmatprep.mubr.msk.f32.mxu1 %vm144_vm0, %v2342_v29  ;;  %v2549_v44 = vsub.f32 %v81_v62, %v2532_v12  ;;  %v938_v27 = vsel %vm924_vm13, %v2622_v9, 0  ;;  %v1052_v41 = vand.u32 4294901760, %v2643_v26 }
  0xa2   :  { %2036 = vmatprep.mubr.f32.mxu0 %v2410_v59  ;;  %v2555_v59 = vand.u32 4294901760, %v2536_v33  ;;  %v2654_v32 = vsub.f32 %v938_v27, %v938_v27 }
  0xa3   :  { %v1053_v53 = vsub.f32 %v2643_v26, %v1052_v41 }
  0xa4   :  { %2073 = vmatmul.mubr.msk.f32.vlgmr.msra.gmra.mxu1 %vm144_vm0, %v2365_v39  ;;  %v1152_v15 = vsub.f32 %v2536_v33, %v2555_v59  ;;  %v1062_v48 = vand.u32 4294901760, %v2654_v32 }
  0xa5   :  { %2037 = vmatmul.mubr.f32.gmra.mxu0 %v2408_v58  ;;  %2075 = vmatprep.mubr.msk.f32.mxu1 %vm144_vm0, %v2339_v28  ;;  %v1145_v58 = vsub.f32 %v2527_v45, %v2541_v6 }
  0xa6   :  { %2039 = vmatprep.mubr.f32.mxu0 %v2439_v13  ;;  %2109 = vmatpush3.msra.mxu1 %v1125_v35  ;;  %v2568_v13 = vand.u32 4294901760, %v2549_v44  ;;  %v1153_v17 = vand.u32 4294901760, %v1152_v15  ;;  %v944_v35 = vsel %vm924_vm13, %v2502_v56, 0 }
  0xa7   :  { %2110 = vmatprep.subr.mxu1 %v1132_v4  ;;  %v1146_v16 = vand.u32 4294901760, %v1145_v58  ;;  %v2682_v8 = vsub.f32 %v944_v35, %v944_v35  ;;  %v1092_v58 = vand.u32 4294901760, %v2690_v61 }
  0xa8   :  { %2076 = vmatmul.mubr.msk.f32.gmra.mxu1 %vm144_vm0, %v2362_v38 }
  0xa9   :  { %2040 = vmatmul.mubr.f32.gmra.mxu0 %v2437_v11  ;;  %2078 = vmatprep.mubr.msk.f32.mxu1 %vm144_vm0, %v2394_v51  ;;  %v926_v11 = vsel %vm924_vm13, %v2562_v10, 0  ;;  %v1082_v5 = vand.u32 4294901760, %v2682_v8 }
  0xaa   :  { %2058 = vmatprep.mubr.msk.f32.mxu0 %vm144_vm0, %v2342_v29  ;;  %2111 = vmatpush3.msra.mxu1 %v1132_v4  ;;  %v1159_v29 = vsub.f32 %v2549_v44, %v2568_v13  ;;  %v2592_v18 = vsub.f32 %v926_v11, %v926_v11  ;;  %v1063_v4 = vsub.f32 %v2654_v32, %v1062_v48 }
  0xab   :  { %2112 = vmatprep.subr.mxu1 %v1139_v7  ;;  %v1093_v11 = vsub.f32 %v2690_v61, %v1092_v58 }
  0xac   :  { %2079 = vmatmul.mubr.msk.f32.gmra.mxu1 %vm144_vm0, %v2391_v50  ;;  %v1160_v20 = vand.u32 4294901760, %v1159_v29  ;;  %v1022_v24 = vand.u32 4294901760, %v2592_v18  ;;  %v1064_v15 = vand.u32 4294901760, %v1063_v4 }
  0xad   :  { %2059 = vmatmul.mubr.msk.f32.vlgmr.msra.gmra.mxu0 %vm144_vm0, %v2365_v39  ;;  %2081 = vmatprep.mubr.msk.f32.mxu1 %vm144_vm0, %v2427_v2  ;;  %v929_v39 = vsel %vm924_vm13, %v2583_v14, 0 }
  0xae   :  { %2085 = vmatpush3.msra.mxu0 %v2359_v37  ;;  %2113 = vmatpush3.msra.mxu1 %v1139_v7  ;;  %v2616_v22 = vsub.f32 %v929_v39, %v929_v39  ;;  %v1054_v7 = vand.u32 4294901760, %v1053_v53 }
  0xaf   :  { %2061 = vmatprep.mubr.msk.f32.mxu0 %vm144_vm0, %v2339_v28  ;;  %2114 = vmatprep.subr.mxu1 %v1146_v16  ;;  %v932_v28 = vsel %vm924_vm13, %v2597_v19, 0 }
  0xb0   :  { %2086 = vmatprep.subr.mxu0 %v2467_v30  ;;  %2115 = vmatpush3.msra.mxu1 %v1146_v16  ;;  %v1032_v25 = vand.u32 4294901760, %v2616_v22  ;;  %v1083_v16 = vsub.f32 %v2682_v8, %v1082_v5 }
  0xb1   :  { %2082 = vmatmul.mubr.msk.f32.gmra.mxu1 %vm144_vm0, %v2424_v1  ;;  %2087 = vmatpush3.msra.mxu0 %v2467_v30 }
  0xb2   :  { %2116 = vmatprep.subr.mxu1 %v1153_v17  ;;  %2062 = vmatmul.mubr.msk.f32.gmra.mxu0 %vm144_vm0, %v2362_v38  ;;  %v2629_v38 = vsub.f32 %v932_v28, %v932_v28  ;;  %v1033_v34 = vsub.f32 %v2616_v22, %v1032_v25  ;;  %v1084_v29 = vand.u32 4294901760, %v1083_v16 }
  0xb3   :  { %2117 = vmatpush3.msra.mxu1 %v1153_v17  ;;  %2120 = vmatprep.mubr.msk.f32.mxu1 %vm924_vm13, %v2562_v10 }
  0xb4   :  { %2064 = vmatprep.mubr.msk.f32.mxu0 %vm144_vm0, %v2394_v51  ;;  %2088 = vmatprep.subr.mxu0 %v2485_v52  ;;  %v1023_v51 = vsub.f32 %v2592_v18, %v1022_v24  ;;  %v1042_v31 = vand.u32 4294901760, %v2629_v38  ;;  %v1034_v43 = vand.u32 4294901760, %v1033_v34 }
  0xb5   :  { %2118 = vmatprep.subr.mxu1 %v1160_v20  ;;  %2089 = vmatpush3.msra.mxu0 %v2485_v52 }
  0xb6   :  { %2119 = vmatpush3.msra.mxu1 %v1160_v20  ;;  %2090 = vmatprep.subr.mxu0 %v2507_v60 }
  0xb7   :  { %2121 = vmatmul.mubr.msk.f32.vlgmr.msra.gmra.mxu1 %vm924_vm13, %v2583_v14  ;;  %2065 = vmatmul.mubr.msk.f32.gmra.mxu0 %vm144_vm0, %v2391_v50  ;;  %v941_v50 = vsel %vm924_vm13, %v2483_v47, 0 }
  0xb8   :  { %2091 = vmatpush3.msra.mxu0 %v2507_v60  ;;  %2123 = vmatprep.mubr.msk.f32.mxu1 %vm924_vm13, %v2597_v19  ;;  %v2671_v40 = vsub.f32 %v941_v50, %v941_v50 }
  0xb9   :  { %2067 = vmatprep.mubr.msk.f32.mxu0 %vm144_vm0, %v2427_v2  ;;  %2092 = vmatprep.subr.mxu0 %v2515_v36  ;;  %v1024_v2 = vand.u32 4294901760, %v1023_v51 }
  0xba   :  { %2093 = vmatpush3.msra.mxu0 %v2515_v36  ;;  %2156 = vmatprep.subr.mxu1 %v2359_v37  ;;  %v1072_v63 = vand.u32 4294901760, %v2671_v40 }
  0xbb   :  { %2124 = vmatmul.mubr.msk.f32.gmra.mxu1 %vm924_vm13, %v2610_v21  ;;  %2068 = vmatmul.mubr.msk.f32.gmra.mxu0 %vm144_vm0, %v2424_v1  ;;  %v1043_v1 = vsub.f32 %v2629_v38, %v1042_v31  ;;  %vm1785_vm0 = vcmask 261120  }
  0xbc   :  { %2126 = vmatprep.mubr.msk.f32.mxu1 %vm924_vm13, %v2622_v9  ;;  %2157 = vmatpush3.msra.mxu1 %v2359_v37 }
  0xbd   :  { %2094 = vmatprep.subr.mxu0 %v2532_v12  ;;  %2096 = vmatprep.mubr.f32.mxu0 %v1024_v2  ;;  %v1044_v62 = vand.u32 4294901760, %v1043_v1 }
  0xbe   :  { %2158 = vmatprep.subr.mxu1 %v2467_v30  ;;  %2095 = vmatpush3.msra.mxu0 %v2532_v12 }
  0xbf   :  { %2159 = vmatpush3.msra.mxu1 %v2467_v30  ;;  %2132 = vmatprep.subr.mxu0 %v2388_v49 }
  0xc0   :  { %2127 = vmatmul.mubr.msk.f32.gmra.mxu1 %vm924_vm13, %v2483_v47  ;;  %2160 = vmatprep.subr.mxu1 %v2485_v52 }
  0xc1   :  { %2097 = vmatmul.mubr.f32.vlgmr.msra.gmra.mxu0 %v1034_v43  ;;  %2129 = vmatprep.mubr.msk.f32.mxu1 %vm924_vm13, %v2502_v56 }
  0xc2   :  { %2133 = vmatpush3.msra.mxu0 %v2388_v49  ;;  %2161 = vmatpush3.msra.mxu1 %v2485_v52  ;;  %v1073_v49 = vsub.f32 %v2671_v40, %v1072_v63 }
  0xc3   :  { %2099 = vmatprep.mubr.f32.mxu0 %v1044_v62  ;;  %2162 = vmatprep.subr.mxu1 %v2507_v60 }
  0xc4   :  { %2134 = vmatprep.subr.mxu0 %v2480_v46  ;;  %2163 = vmatpush3.msra.mxu1 %v2507_v60 }
  0xc5   :  { %2130 = vmatmul.mubr.msk.f32.gmra.mxu1 %vm924_vm13, %v2499_v55  ;;  %2135 = vmatpush3.msra.mxu0 %v2480_v46  ;;  %v1074_v46 = vand.u32 4294901760, %v1073_v49 }
  0xc6   :  { %2164 = vmatprep.subr.mxu1 %v2515_v36  ;;  %2100 = vmatmul.mubr.f32.gmra.mxu0 %v1054_v7 }
  0xc7   :  { %2165 = vmatpush3.msra.mxu1 %v2515_v36  ;;  %2168 = vmatprep.mubr.f32.mxu1 %v1022_v24 }
  0xc8   :  { %2102 = vmatprep.mubr.f32.mxu0 %v1064_v15  ;;  %2136 = vmatprep.subr.mxu0 %v2505_v57 }
  0xc9   :  { %2166 = vmatprep.subr.mxu1 %v2532_v12  ;;  %2137 = vmatpush3.msra.mxu0 %v2505_v57  ;;  %v1094_v57 = vand.u32 4294901760, %v1093_v11 }
  0xca   :  { %2167 = vmatpush3.msra.mxu1 %v2532_v12  ;;  %2138 = vmatprep.subr.mxu0 %v2527_v45 }
  0xcb   :  { %2169 = vmatmul.mubr.f32.vlgmr.msra.gmra.mxu1 %v1032_v25  ;;  %2103 = vmatmul.mubr.f32.gmra.mxu0 %v1074_v46 }
  0xcc   :  { %2139 = vmatpush3.msra.mxu0 %v2527_v45  ;;  %2171 = vmatprep.mubr.f32.mxu1 %v1042_v31 }
  0xcd   :  { %2105 = vmatprep.mubr.f32.mxu0 %v1084_v29  ;;  %2140 = vmatprep.subr.mxu0 %v2536_v33 }
  0xce   :  { %2141 = vmatpush3.msra.mxu0 %v2536_v33  ;;  %2204 = vmatprep.subr.mxu1 %v2359_v37 }
  0xcf   :  { %2172 = vmatmul.mubr.f32.gmra.mxu1 %v1052_v41  ;;  %2106 = vmatmul.mubr.f32.gmra.mxu0 %v1094_v57 }
  0xd0   :  { %2174 = vmatprep.mubr.f32.mxu1 %v1062_v48  ;;  %2205 = vmatpush3.msra.mxu1 %v2359_v37 }
  0xd1   :  { %2142 = vmatprep.subr.mxu0 %v2549_v44  ;;  %2144 = vmatprep.mubr.f32.mxu0 %v2592_v18 }
  0xd2   :  { %2206 = vmatprep.subr.mxu1 %v2467_v30  ;;  %2143 = vmatpush3.msra.mxu0 %v2549_v44 }
  0xd3   :  { %2207 = vmatpush3.msra.mxu1 %v2467_v30  ;;  %2180 = vmatprep.subr.mxu0 %v2421_v0 }
  0xd4   :  { %2175 = vmatmul.mubr.f32.gmra.mxu1 %v1072_v63  ;;  %2208 = vmatprep.subr.mxu1 %v2485_v52 }
  0xd5   :  { %2145 = vmatmul.mubr.f32.vlgmr.msra.gmra.mxu0 %v2616_v22  ;;  %2177 = vmatprep.mubr.f32.mxu1 %v1082_v5 }
  0xd6   :  { %2181 = vmatpush3.msra.mxu0 %v2421_v0  ;;  %2209 = vmatpush3.msra.mxu1 %v2485_v52 }
  0xd7   :  { %2147 = vmatprep.mubr.f32.mxu0 %v2629_v38  ;;  %2210 = vmatprep.subr.mxu1 %v2507_v60 }
  0xd8   :  { %2182 = vmatprep.subr.mxu0 %v2496_v54  ;;  %2211 = vmatpush3.msra.mxu1 %v2507_v60 }
  0xd9   :  { %2178 = vmatmul.mubr.f32.gmra.mxu1 %v1092_v58  ;;  %2183 = vmatpush3.msra.mxu0 %v2496_v54 }
  0xda   :  { %2212 = vmatprep.subr.mxu1 %v2515_v36  ;;  %2148 = vmatmul.mubr.f32.gmra.mxu0 %v2643_v26 }
  0xdb   :  { %2213 = vmatpush3.msra.mxu1 %v2515_v36  ;;  %2216 = vmatprep.mubr.msk.f32.mxu1 %vm924_vm13, %v2562_v10 }
  0xdc   :  { %2150 = vmatprep.mubr.f32.mxu0 %v2654_v32  ;;  %2184 = vmatprep.subr.mxu0 %v2524_v3 }
  0xdd   :  { %2214 = vmatprep.subr.mxu1 %v2532_v12  ;;  %2185 = vmatpush3.msra.mxu0 %v2524_v3 }
  0xde   :  { %2215 = vmatpush3.msra.mxu1 %v2532_v12  ;;  %2186 = vmatprep.subr.mxu0 %v2541_v6 }
  0xdf   :  { %2217 = vmatmul.mubr.msk.f32.vlgmr.msra.gmra.mxu1 %vm924_vm13, %v2583_v14  ;;  %2151 = vmatmul.mubr.f32.gmra.mxu0 %v2671_v40 }
  0xe0   :  { %2187 = vmatpush3.msra.mxu0 %v2541_v6  ;;  %2219 = vmatprep.mubr.msk.f32.mxu1 %vm924_vm13, %v2597_v19 }
  0xe1   :  { %2153 = vmatprep.mubr.f32.mxu0 %v2682_v8  ;;  %2188 = vmatprep.subr.mxu0 %v2555_v59 }
  0xe2   :  { %2189 = vmatpush3.msra.mxu0 %v2555_v59 }
  0xe3   :  { %2220 = vmatmul.mubr.msk.f32.gmra.mxu1 %vm924_vm13, %v2610_v21  ;;  %2154 = vmatmul.mubr.f32.gmra.mxu0 %v2690_v61 }
  0xe4   :  { %2222 = vmatprep.mubr.msk.f32.mxu1 %vm924_vm13, %v2622_v9  ;;  %2190 = vmatprep.subr.mxu0 %v2568_v13 }
  0xe5   :  { %2192 = vmatprep.mubr.msk.f32.mxu0 %vm924_vm13, %v2562_v10  ;;  %2191 = vmatpush3.msra.mxu0 %v2568_v13 }
  0xe7   :  { %2223 = vmatmul.mubr.msk.f32.gmra.mxu1 %vm924_vm13, %v2483_v47  ;;  %2193 = vmatmul.mubr.msk.f32.vlgmr.msra.gmra.mxu0 %vm924_vm13, %v2583_v14 }
  0xe8   :  { %2225 = vmatprep.mubr.msk.f32.mxu1 %vm924_vm13, %v2502_v56  ;;  %2195 = vmatprep.mubr.msk.f32.mxu0 %vm924_vm13, %v2597_v19 }
  0xeb   :  { %2226 = vmatmul.mubr.msk.f32.gmra.mxu1 %vm924_vm13, %v2499_v55  ;;  %2196 = vmatmul.mubr.msk.f32.gmra.mxu0 %vm924_vm13, %v2610_v21 }
  0xec   :  { %2198 = vmatprep.mubr.msk.f32.mxu0 %vm924_vm13, %v2622_v9 }
  0xef   :  { %2199 = vmatmul.mubr.msk.f32.gmra.mxu0 %vm924_vm13, %v2483_v47 }
  0xf0   :  { %2201 = vmatprep.mubr.msk.f32.mxu0 %vm924_vm13, %v2502_v56 }
  0xf3   :  { %2202 = vmatmul.mubr.msk.f32.gmra.mxu0 %vm924_vm13, %v2499_v55 }
 0x144   :  { %v2018_v37 = vpop.f32.mrf.mxu1 }
 0x146   :  { %v387_v0 = vpop.f32.mrf.mxu1 }
 0x148   :  { %v2021_v30 = vpop.f32.mrf.mxu1 }
 0x14a   :  { %v399_v52 = vpop.f32.mrf.mxu1 }
 0x14c   :  { %v2024_v54 = vpop.f32.mrf.mxu1 }
 0x14d   :  { %v2004_v60 = vpop.f32.mrf.mxu0 }
 0x14e   :  { %v2791_v36 = vadd.f32 %v2018_v37, %v2004_v60  ;;  %v411_v3 = vpop.f32.mrf.mxu1 }
 0x14f   :  { %v241_v45 = vpop.f32.mrf.mxu0 }
 0x150   :  { %v2793_v12 = vadd.f32 %v387_v0, %v241_v45  ;;  %v2027_v33 = vpop.f32.mrf.mxu1 }
 0x151   :  { %v2007_v47 = vpop.f32.mrf.mxu0 }
 0x152   :  { %v2795_v6 = vadd.f32 %v2021_v30, %v2007_v47  ;;  %v423_v56 = vpop.f32.mrf.mxu1 }
 0x153   :  { %v261_v44 = vpop.f32.mrf.mxu0 }
 0x154   :  { %v2797_v59 = vadd.f32 %v399_v52, %v261_v44  ;;  %v2799_v55 = vpop.f32.mrf.mxu1 }
 0x155   :  { %v2010_v10 = vpop.f32.mrf.mxu0 }
 0x156   :  { %v2801_v13 = vadd.f32 %v2024_v54, %v2010_v10  ;;  %v2803_v14 = vpop.f32.mrf.mxu1 }
 0x157   :  { %v281_v17 = vpop.f32.mrf.mxu0 }
 0x158   :  { %v2805_v18 = vadd.f32 %v411_v3, %v281_v17  ;;  %v2807_v19 = vpop.f32.mrf.mxu1 }
 0x159   :  { %v2013_v39 = vpop.f32.mrf.mxu0 }
 0x15a   :  { %v2809_v20 = vadd.f32 %v2027_v33, %v2013_v39  ;;  %v2811_v21 = vpop.f32.mrf.mxu1 }
 0x15b   :  { %v301_v28 = vpop.f32.mrf.mxu0 }
 0x15c   :  { %v2813_v22 = vadd.f32 %v423_v56, %v301_v28  ;;  %v2815_v24 = vpop.f32.mrf.mxu1 }
 0x15d   :  { %v2032_v9 = vpop.f32.mrf.mxu0 }
 0x15e   :  { %v2817_v23 = vpop.f32.mrf.mxu1 }
 0x15f   :  { %v503_v38 = vpop.f32.mrf.mxu0 }
 0x160   :  { %v2819_v25 = vpop.f32.mrf.mxu1 }
 0x161   :  { %v2035_v27 = vpop.f32.mrf.mxu0 }
 0x162   :  { %v2821_v51 = vpop.f32.mrf.mxu1 }
 0x163   :  { %3022 = vst [vmem:[#allocation2_spill] sm:$0xff] %v2821_v51  ;;  %v517_v26 = vpop.f32.mrf.mxu0 }
 0x164   :  { %v2823_v31 = vpop.f32.mrf.mxu1 }
 0x165   :  { %v2825_v50 = vpop.f32.mrf.mxu0 }
 0x166   :  { %v2827_v32 = vpop.f32.mrf.mxu1 }
 0x167   :  { %v531_v34 = vpop.f32.mrf.mxu0 }
 0x168   :  { %v2829_v2 = vpop.f32.mrf.mxu1 }
 0x169   :  { %v2831_v35 = vpop.f32.mrf.mxu0 }
 0x16a   :  { %v2833_v41 = vpop.f32.mrf.mxu1 }
 0x16b   :  { %3023 = vst [vmem:[#allocation3_spill] sm:$0xff] %v2833_v41  ;;  %v2835_v40 = vpop.f32.mrf.mxu0  ;;  %v511_v41 = vadd.f32 %v2032_v9, %v2791_v36  ;;  %v539_v36 = vadd.f32 %v2825_v50, %v2801_v13 }
 0x16c   :  { %v2837_v1 = vpop.f32.mrf.mxu1 }
 0x16d   :  { %3024 = vst [vmem:[#allocation4_spill] sm:$0xff] %v2837_v1  ;;  %v2839_v42 = vpop.f32.mrf.mxu0 }
 0x16e   :  { %v2841_v48 = vpop.f32.mrf.mxu1 }
 0x16f   :  { %3025 = vst [vmem:[#allocation5_spill] sm:$0xff] %v2841_v48  ;;  %v2843_v43 = vpop.f32.mrf.mxu0  ;;  %v916_v48 = vld [vmem:[%s3019_s4] sm:$0xff] }
 0x171   :  { %v2845_v8 = vpop.f32.mrf.mxu1 }
 0x172   :  { %3026 = vst [vmem:[#allocation6_spill] sm:$0xff] %v2845_v8  ;;  %v2847_v53 = vpop.f32.mrf.mxu0 }
 0x173   :  { %v2849_v61 = vpop.f32.mrf.mxu1 }
 0x174   :  { %3027 = vst [vmem:[#allocation7_spill] sm:$0xff] %v2849_v61  ;;  %v2851_v62 = vpop.f32.mrf.mxu0  ;;  %v917_v61 = vld [vmem:[%s3019_s4 + $0x8] sm:$0xff] }
 0x177   :  { %v2122_v63 = vpop.f32.mrf.mxu1  ;;  %v2853_v4 = vpop.f32.mrf.mxu0 }
 0x178   :  { %3028 = vst [vmem:[#allocation8_spill] sm:$0xff] %v2853_v4 }
 0x179   :  { %v1197_v5 = vpop.f32.mrf.mxu1  ;;  %v2855_v7 = vpop.f32.mrf.mxu0 }
 0x17a   :  { %3029 = vst [vmem:[#allocation9_spill] sm:$0xff] %v2855_v7 }
 0x17b   :  { %v2125_v49 = vpop.f32.mrf.mxu1  ;;  %v2857_v58 = vpop.f32.mrf.mxu0 }
 0x17c   :  { %3030 = vst [vmem:[#allocation10_spill] sm:$0xff] %v2857_v58 }
 0x17d   :  { %v2859_v15 = vpop.f32.mrf.mxu1  ;;  %v2861_v16 = vpop.f32.mrf.mxu0 }
 0x17e   :  { %3031 = vst [vmem:[#allocation11_spill] sm:$0xff] %v2861_v16 }
 0x180   :  { %v2863_v46 = vpop.f32.mrf.mxu1 }
 0x181   :  { %v2098_v11 = vpop.f32.mrf.mxu0 }
 0x182   :  { %v2865_v29 = vpop.f32.mrf.mxu1  ;;  %v1037_v58 = vadd.f32 %v2098_v11, %v917_v61  ;;  %v518_v61 = vadd.f32 %v517_v26, %v2797_v59  ;;  %v635_v26 = vadd.f32 %v2799_v55, %v511_v41 }
 0x183   :  { %v1026_v57 = vpop.f32.mrf.mxu0 }
 0x184   :  { %v1027_v7 = vadd.f32 %v1026_v57, %v916_v48  ;;  %v1204_v48 = vadd.f32 %v2122_v63, %v1037_v58  ;;  %v643_v50 = vadd.f32 %v2811_v21, %v518_v61  ;;  %v763_v55 = vadd.f32 %v2839_v42, %v635_v26 }
 0x185   :  { %v2867_v37 = vpop.f32.mrf.mxu1  ;;  %v546_v42 = vadd.f32 %v2835_v40, %v2813_v22 }
 0x186   :  { %v2101_v0 = vpop.f32.mrf.mxu0  ;;  %v1198_v59 = vadd.f32 %v1197_v5, %v1027_v7 }
 0x187   :  { %v2869_v30 = vpop.f32.mrf.mxu1 }
 0x188   :  { %3032 = vst [vmem:[#allocation12_spill] sm:$0xff] %v2869_v30  ;;  %v1046_v52 = vpop.f32.mrf.mxu0  ;;  %v918_v30 = vld [vmem:[%s3019_s4 + $0x10] sm:$0xff] }
 0x18b   :  { %v2170_v54 = vpop.f32.mrf.mxu1  ;;  %v2104_v60 = vpop.f32.mrf.mxu0 }
 0x18d   :  { %v2871_v3 = vpop.f32.mrf.mxu1  ;;  %v1066_v45 = vpop.f32.mrf.mxu0 }
 0x18f   :  { %v2873_v33 = vpop.f32.mrf.mxu1  ;;  %v2107_v47 = vpop.f32.mrf.mxu0 }
 0x191   :  { %v2875_v56 = vpop.f32.mrf.mxu1  ;;  %v2877_v44 = vpop.f32.mrf.mxu0 }
 0x192   :  { %3033 = vst [vmem:[#allocation13_spill] sm:$0xff] %v2875_v56 }
 0x194   :  { %v2879_v10 = vpop.f32.mrf.mxu1 }
 0x195   :  { %3034 = vst [vmem:[#allocation14_spill] sm:$0xff] %v2879_v10  ;;  %v2146_v17 = vpop.f32.mrf.mxu0  ;;  %v504_v10 = vadd.f32 %v503_v38, %v2793_v12  ;;  %v532_v12 = vadd.f32 %v531_v34, %v2805_v18  ;;  %v1047_v38 = vadd.f32 %v1046_v52, %v918_v30  ;;  %v553_v18 = vadd.f32 %v2831_v35, %v2809_v20  ;;  %v923_v34 = vld [vmem:[%s3019_s4 + $0x38] sm:$0xff]  ;;  %v922_v20 = vld [vmem:[%s3019_s4 + $0x30] sm:$0xff] }
 0x196   :  { %v2881_v39 = vpop.f32.mrf.mxu1  ;;  %v1331_v57 = vadd.f32 %v2146_v17, %v1204_v48 }
 0x197   :  { %3035 = vst [vmem:[#allocation15_spill] sm:$0xff] %v2881_v39  ;;  %v1323_v28 = vpop.f32.mrf.mxu0  ;;  %v919_v39 = vld [vmem:[%s3019_s4 + $0x18] sm:$0xff]  ;;  %v1210_v35 = vadd.f32 %v2859_v15, %v1047_v38  ;;  %v1087_v15 = vadd.f32 %v2877_v44, %v922_v20  ;;  %v3045_v20 = vld [vmem:[#allocation4_spill] sm:$0xff] }
 0x198   :  { %v1057_v11 = vadd.f32 %v2101_v0, %v919_v39  ;;  %v627_v0 = vadd.f32 %v2803_v14, %v504_v10  ;;  %v1324_v30 = vadd.f32 %v1323_v28, %v1198_v59  ;;  %v667_v14 = vadd.f32 %v2815_v24, %v539_v36  ;;  %v3039_v36 = vld [vmem:[#allocation8_spill] sm:$0xff] }
 0x199   :  { %v2886_v8 = vpop.f32.mrf.mxu1  ;;  %v1460_v7 = vadd.f32 %v2170_v54, %v1331_v57 }
 0x19a   :  { %3036 = vst [vmem:[#allocation16_spill] sm:$0xff] %v2886_v8  ;;  %v2149_v16 = vpop.f32.mrf.mxu0  ;;  %v525_v8 = vadd.f32 %v2035_v27, %v2795_v6  ;;  %v920_v27 = vld [vmem:[%s3019_s4 + $0x20] sm:$0xff]  ;;  %v1216_v5 = vadd.f32 %v2125_v49, %v1057_v11  ;;  %v1097_v49 = vadd.f32 %v2107_v47, %v923_v34  ;;  %v1452_v17 = vadd.f32 %v2871_v3, %v1324_v30 }
 0x19b   :  { %v2891_v51 = vpop.f32.mrf.mxu1 }
 0x19c   :  { %3037 = vst [vmem:[#allocation17_spill] sm:$0xff] %v2891_v51  ;;  %v1337_v1 = vpop.f32.mrf.mxu0  ;;  %v921_v51 = vld [vmem:[%s3019_s4 + $0x28] sm:$0xff]  ;;  %v651_v63 = vadd.f32 %v2807_v19, %v525_v8  ;;  %v659_v19 = vadd.f32 %v2817_v23, %v532_v12  ;;  %v757_v8 = vadd.f32 %v2843_v43, %v627_v0  ;;  %v1345_v21 = vadd.f32 %v2149_v16, %v1216_v5 }
 0x19d   :  { %v1077_v58 = vadd.f32 %v2104_v60, %v921_v51  ;;  %v1067_v51 = vadd.f32 %v1066_v45, %v920_v27  ;;  %v683_v43 = vadd.f32 %v2819_v25, %v553_v18  ;;  %v1338_v45 = vadd.f32 %v1337_v1, %v1210_v35  ;;  %v3047_v35 = vld [vmem:[#allocation2_spill] sm:$0xff] }
 0x19e   :  { %v775_v24 = vadd.f32 %v2847_v53, %v651_v63  ;;  %v877_v16 = vadd.f32 %v2823_v31, %v763_v55  ;;  %v871_v53 = vadd.f32 %v2827_v32, %v757_v8  ;;  %v1476_v28 = vadd.f32 %v2873_v33, %v1345_v21  ;;  %v3044_v5 = vld [vmem:[#allocation15_spill] sm:$0xff] }
 0x19f   :  { %v2218_v4 = vpop.f32.mrf.mxu1  ;;  %v2152_v56 = vpop.f32.mrf.mxu0  ;;  %v1228_v23 = vadd.f32 %v2863_v46, %v1077_v58  ;;  %v1222_v22 = vadd.f32 %v2865_v29, %v1067_v51  ;;  %v769_v1 = vadd.f32 %v2851_v62, %v643_v50  ;;  %v1240_v3 = vadd.f32 %v2867_v37, %v1097_v49  ;;  %v1769_v62 = vld [vmem:[%s3020_s5] sm:$0xff]  ;;  %v3043_v58 = vld [vmem:[#allocation9_spill] sm:$0xff] }
 0x1a0   :  { %v889_v25 = vadd.f32 %v2829_v2, %v775_v24  ;;  %v787_v33 = vadd.f32 %v3039_v36, %v667_v14  ;;  %v3040_v2 = vld [vmem:[#allocation12_spill] sm:$0xff]  ;;  %v781_v18 = vadd.f32 %v3043_v58, %v659_v19  ;;  %v3053_v36 = vld [vmem:[#allocation7_spill] sm:$0xff] }
 0x1a1   :  { %v1715_v6 = vpop.f32.mrf.mxu1  ;;  %v1351_v9 = vpop.f32.mrf.mxu0  ;;  %v1359_v54 = vadd.f32 %v2152_v56, %v1228_v23  ;;  %v1770_v56 = vld [vmem:[%s3020_s5 + $0x8] sm:$0xff]  ;;  %v1234_v38 = vadd.f32 %v3040_v2, %v1087_v15  ;;  %v1771_v24 = vld [vmem:[%s3020_s5 + $0x10] sm:$0xff] }
 0x1a2   :  { %v1352_v61 = vadd.f32 %v1351_v9, %v1222_v22  ;;  %v3041_v9 = vld [vmem:[#allocation14_spill] sm:$0xff]  ;;  %v901_v19 = vadd.f32 %v3045_v20, %v787_v33  ;;  %v3048_v23 = vld [vmem:[#allocation16_spill] sm:$0xff]  ;;  %v3050_v15 = vld [vmem:[#allocation11_spill] sm:$0xff] }
 0x1a3   :  { %v2221_v39 = vpop.f32.mrf.mxu1  ;;  %v2155_v13 = vpop.f32.mrf.mxu0  ;;  %v1492_v27 = vadd.f32 %v3041_v9, %v1359_v54  ;;  %v1774_v22 = vld [vmem:[%s3020_s5 + $0x28] sm:$0xff] }
 0x1a4   :  { %v1373_v12 = vadd.f32 %v2155_v13, %v1240_v3  ;;  %v1772_v13 = vld [vmem:[%s3020_s5 + $0x18] sm:$0xff]  ;;  %v1484_v55 = vadd.f32 %v3044_v5, %v1352_v61  ;;  %v3052_v61 = vld [vmem:[#allocation6_spill] sm:$0xff] }
 0x1a5   :  { %v1365_v41 = vpop.f32.mrf.mxu0  ;;  %v1727_v52 = vpop.f32.mrf.mxu1 }
 0x1a6   :  { %v1366_v50 = vadd.f32 %v1365_v41, %v1234_v38  ;;  %v3046_v41 = vld [vmem:[#allocation10_spill] sm:$0xff] }
 0x1a7   :  { %v2194_v60 = vpop.f32.mrf.mxu0  ;;  %v2224_v31 = vpop.f32.mrf.mxu1  ;;  %v799_v21 = vadd.f32 %v3046_v41, %v683_v43 }
 0x1a8   :  { %v1603_v10 = vadd.f32 %v2194_v60, %v1460_v7  ;;  %v675_v7 = vadd.f32 %v3047_v35, %v546_v42  ;;  %v1508_v60 = vadd.f32 %v3048_v23, %v1373_v12 }
 0x1a9   :  { %v1596_v40 = vpop.f32.mrf.mxu0  ;;  %v1739_v34 = vpop.f32.mrf.mxu1  ;;  %v913_v3 = vadd.f32 %v3052_v61, %v799_v21 }
 0x1aa   :  { %v1722_v47 = vadd.f32 %v2218_v4, %v1603_v10  ;;  %v1597_v46 = vadd.f32 %v1596_v40, %v1452_v17  ;;  %v3038_v4 = vld [vmem:[#allocation13_spill] sm:$0xff]  ;;  %v793_v42 = vadd.f32 %v3050_v15, %v675_v7 }
 0x1ab   :  { %v2197_v29 = vpop.f32.mrf.mxu0  ;;  %v1468_v48 = vadd.f32 %v3038_v4, %v1338_v45  ;;  %v2227_v54 = vpop.f32.mrf.mxu1 }
 0x1ac   :  { %v1762_v44 = vadd.f32 %v1722_v47, %v877_v16  ;;  %v1716_v11 = vadd.f32 %v1715_v6, %v1597_v46  ;;  %v1615_v32 = vadd.f32 %v2197_v29, %v1476_v28  ;;  %v3042_v6 = vld [vmem:[#allocation3_spill] sm:$0xff]  ;;  %v3049_v16 = vld [vmem:[#allocation5_spill] sm:$0xff]  ;;  %v907_v33 = vadd.f32 %v3053_v36, %v793_v42 }
 0x1ad   :  { %v1608_v37 = vpop.f32.mrf.mxu0  ;;  %v883_v63 = vadd.f32 %v3042_v6, %v769_v1  ;;  %v895_v43 = vadd.f32 %v3049_v16, %v781_v18  ;;  %v1751_v4 = vpop.f32.mrf.mxu1 }
 0x1ae   :  { %v1778_v57 = vadd.f32 %v1770_v56, %v1762_v44  ;;  %v1761_v59 = vadd.f32 %v1716_v11, %v871_v53  ;;  %v1734_v26 = vadd.f32 %v2221_v39, %v1615_v32  ;;  %v1609_v0 = vadd.f32 %v1608_v37, %v1468_v48  ;;  %v3051_v53 = vld [vmem:[#allocation17_spill] sm:$0xff] }
 0x1af   :  { %v2200_v30 = vpop.f32.mrf.mxu0  ;;  %v1500_v47 = vadd.f32 %v3051_v53, %v1366_v50  ;;  %v1776_v48 = vld [vmem:[%s3020_s5 + $0x38] sm:$0xff] }
 0x1b0   :  { %1787 = vst.msk [vmem:[%s3021_s6 + $0x8] sm:$0xff] %vm1785_vm0, %v1778_v57  ;;  %v1777_v39 = vadd.f32 %v1769_v62, %v1761_v59  ;;  %v1764_v14 = vadd.f32 %v1734_v26, %v889_v25  ;;  %v1728_v51 = vadd.f32 %v1727_v52, %v1609_v0  ;;  %v1627_v8 = vadd.f32 %v2200_v30, %v1492_v27  ;;  %v1775_v62 = vld [vmem:[%s3020_s5 + $0x30] sm:$0xff] }
 0x1b1   :  { %v1620_v49 = vpop.f32.mrf.mxu0 }
 0x1b2   :  { %1786 = vst.msk [vmem:[%s3021_s6] sm:$0xff] %vm1785_vm0, %v1777_v39  ;;  %v1780_v52 = vadd.f32 %v1772_v13, %v1764_v14  ;;  %v1763_v45 = vadd.f32 %v1728_v51, %v883_v63  ;;  %v1746_v10 = vadd.f32 %v2224_v31, %v1627_v8  ;;  %v1621_v17 = vadd.f32 %v1620_v49, %v1484_v55  ;;  %v1773_v31 = vld [vmem:[%s3020_s5 + $0x20] sm:$0xff] }
 0x1b3   :  { %v2203_v40 = vpop.f32.mrf.mxu0 }
 0x1b4   :  { %1789 = vst.msk [vmem:[%s3021_s6 + $0x18] sm:$0xff] %vm1785_vm0, %v1780_v52  ;;  %v1779_v46 = vadd.f32 %v1771_v24, %v1763_v45  ;;  %v1766_v28 = vadd.f32 %v1746_v10, %v901_v19  ;;  %v1740_v25 = vadd.f32 %v1739_v34, %v1621_v17  ;;  %v1639_v1 = vadd.f32 %v2203_v40, %v1508_v60 }
 0x1b5   :  { %v1632_v56 = vpop.f32.mrf.mxu0 }
 0x1b6   :  { %1788 = vst.msk [vmem:[%s3021_s6 + $0x10] sm:$0xff] %vm1785_vm0, %v1779_v46  ;;  %v1782_v29 = vadd.f32 %v1774_v22, %v1766_v28  ;;  %v1765_v44 = vadd.f32 %v1740_v25, %v895_v43  ;;  %v1758_v11 = vadd.f32 %v2227_v54, %v1639_v1  ;;  %v1633_v32 = vadd.f32 %v1632_v56, %v1500_v47 }
 0x1b8   :  { %1791 = vst.msk [vmem:[%s3021_s6 + $0x28] sm:$0xff] %vm1785_vm0, %v1782_v29  ;;  %v1781_v12 = vadd.f32 %v1773_v31, %v1765_v44  ;;  %v1768_v2 = vadd.f32 %v1758_v11, %v913_v3  ;;  %v1752_v38 = vadd.f32 %v1751_v4, %v1633_v32 }
 0x1ba   :  { %1790 = vst.msk [vmem:[%s3021_s6 + $0x20] sm:$0xff] %vm1785_vm0, %v1781_v12  ;;  %v1784_v37 = vadd.f32 %v1776_v48, %v1768_v2  ;;  %v1767_v9 = vadd.f32 %v1752_v38, %v907_v33 }
 0x1bc   :  { %1793 = vst.msk [vmem:[%s3021_s6 + $0x38] sm:$0xff] %vm1785_vm0, %v1784_v37  ;;  %v1783_v27 = vadd.f32 %v1775_v62, %v1767_v9 }
 0x1be   :  { %1792 = vst.msk [vmem:[%s3021_s6 + $0x30] sm:$0xff] %vm1785_vm0, %v1783_v27 }

</bundles_post_ra>
